<compile_context>
chip_gen: v7x
topology: tpu7x:2x2x1
jax: 0.10.0
libtpu: 0.0.40
codegen_flags: <defaults>
</compile_context>

<pallas_src>
from functools import partial

import jax
import jax.numpy as jnp
from jax.experimental import pallas as pl
from jax.experimental.pallas import tpu as pltpu


def resblock_kernel(x_ref, w_ref, b_ref, o_ref):
    """One sub-batch of NB images per grid step.

    x_ref : (NB, H, WC)      lane-dense activations (also the residual)
    w_ref : (2, 3*WC, WC)    bf16 folded conv weights, resident
                             row index = kh*WC + w_in*C + ci, col = w_out*C + co
                             (kw taps + width-axis reflect folded in)
    b_ref : (2, WC)          f32 per-conv bias, tiled across w, resident
    o_ref : (NB, H, WC)      lane-dense output
    """
    NB, H, WC = x_ref.shape
    M = NB * H
    x = x_ref[...].astype(jnp.float32)                     # (NB, H, WC)

    def conv(v, ci):
        # Row-reflect taps built as values (no VMEM scratch round trip).
        # tap_kh[n, h, :] == reflect_pad_rows(v[n])[h + kh, :]
        t0 = jnp.concatenate([v[:, 1:2, :], v[:, :H - 1, :]], axis=1)      # rows 1,0..H-2
        t2 = jnp.concatenate([v[:, 1:, :], v[:, H - 2:H - 1, :]], axis=1)  # rows 1..H-1,H-2
        a0 = t0.reshape(M, WC).astype(jnp.bfloat16)
        a1 = v.reshape(M, WC).astype(jnp.bfloat16)
        a2 = t2.reshape(M, WC).astype(jnp.bfloat16)
        # Per-kh accumulated MXU dots: bf16 operands, f32 accumulate.  No wide
        # (M, 3*WC) temporary is materialized.
        acc = jnp.dot(a0, w_ref[ci, 0 * WC:1 * WC, :],
                      preferred_element_type=jnp.float32)
        acc = acc + jnp.dot(a1, w_ref[ci, 1 * WC:2 * WC, :],
                            preferred_element_type=jnp.float32)
        acc = acc + jnp.dot(a2, w_ref[ci, 2 * WC:3 * WC, :],
                            preferred_element_type=jnp.float32)
        acc = acc + b_ref[ci:ci + 1, :]                    # (1, WC) broadcast
        return acc.reshape(NB, H, WC)

    y = jnp.maximum(conv(x, 0), 0.0)    # Conv2dBlock 1: reflect pad + conv + bias + ReLU
    z = conv(y, 1)                      # Conv2dBlock 2: reflect pad + conv + bias
    o_ref[...] = (z + x).astype(o_ref.dtype)               # residual add


def _fold_conv3x3_reflect(w_oihw, width, dtype=jnp.bfloat16):
    """Fold 3x3 conv weights (PyTorch OIHW) + width-axis reflect(1) pad into
    three (W*Cin, W*Cout) matrices m[kh] so that, for lane-dense activations
    tap_kh[h, w*C + ci] = xpad_rows[h + kh, w*C + ci], the conv is
    sum_kh tap_kh @ m[kh], with
      m[kh][w_in*C + ci, w_out*C + co]
        = sum_{kw : reflect(w_out + kw - 1) == w_in} W[kh, kw, ci, co].
    Tiny (weights only); built once per weight set (hoisted out of the
    per-call path).
    """
    w = jnp.transpose(w_oihw, (2, 3, 1, 0)).astype(jnp.float32)   # HWIO (3,3,Ci,Co)
    cin, cout = w.shape[2], w.shape[3]
    cols = jnp.arange(width)
    mats = []
    for kh in range(3):
        m = jnp.zeros((width * cin, width * cout), jnp.float32)
        for kw in range(3):
            w_in = cols + (kw - 1)
            w_in = jnp.where(w_in < 0, -w_in, w_in)                        # left reflect
            w_in = jnp.where(w_in >= width, 2 * (width - 1) - w_in, w_in)  # right reflect
            sel = jax.nn.one_hot(w_in, width, dtype=jnp.float32).T         # [w_in, w_out]
            m = m + jnp.kron(sel, w[kh, kw])
        mats.append(m)
    return jnp.stack(mats, 0).astype(dtype)                        # (3, W*Cin, W*Cout)


def prepare_resblock_params(w1_oihw, b1, w2_oihw, b2, width):
    """Build the packed, folded bf16 weights and tiled f32 biases ONCE per
    weight set (inference-time hoist; do not re-run per forward call)."""
    if width < 2:
        raise ValueError("ReflectionPad2d(1) requires W >= 2")
    m1 = _fold_conv3x3_reflect(w1_oihw, width)                     # (3, WC, WC) bf16
    m2 = _fold_conv3x3_reflect(w2_oihw, width)
    wc_in, wc_out = m1.shape[1], m1.shape[2]
    folded_bytes = 2 * 3 * wc_in * wc_out * 2                      # bf16
    if folded_bytes > 24 * 1024 * 1024:
        # v7x has 64 MiB VMEM; past this, K-tile the folded matrix over a
        # reduction grid axis or switch to per-(kh,kw) dots.
        raise ValueError("folded reflect-conv weights too large for resident VMEM")
    w_packed = jnp.stack([m1, m2], 0).reshape(2, 3 * wc_in, wc_out)  # (2, 3*WC, WC)
    b_packed = jnp.stack([jnp.tile(b1, width),
                          jnp.tile(b2, width)], 0).astype(jnp.float32)  # (2, WC)
    return w_packed, b_packed


def _pick_subbatch(n, h):
    """Images per grid step: keep >= 2 grid steps (v7x has 2 TensorCores) while
    growing M = nb*H toward the 256 MXU rows of v6e/v7x.  Returns a divisor of n."""
    if n <= 1:
        return 1
    target = min(n // 2, max(1, 256 // h))
    nb = 1
    for d in range(1, target + 1):
        if n % d == 0:
            nb = d
    return nb


def resblock_lane_dense(x, w_packed, b_packed, *, nb):
    """x: (N, H, W*C) lane-dense activations (W*C ideally a multiple of 128 for
    unmasked lane-dense stores).  nb must divide N.  Returns same shape/dtype."""
    N, H, WC = x.shape
    if H < 2:
        raise ValueError("ReflectionPad2d(1) requires H >= 2")
    if N % nb != 0:
        raise ValueError("nb must divide the batch size")
    return pl.pallas_call(
        resblock_kernel,
        out_shape=jax.ShapeDtypeStruct((N, H, WC), x.dtype),
        grid_spec=pltpu.PrefetchScalarGridSpec(
            num_scalar_prefetch=0,
            grid=(N // nb,),
            in_specs=[
                pl.BlockSpec((nb, H, WC), lambda i: (i, 0, 0)),
                pl.BlockSpec(w_packed.shape, lambda i: (0, 0, 0)),  # weights resident
                pl.BlockSpec(b_packed.shape, lambda i: (0, 0)),     # biases resident
            ],
            out_specs=pl.BlockSpec((nb, H, WC), lambda i: (i, 0, 0)),
        ),
        compiler_params=pltpu.CompilerParams(
            dimension_semantics=("parallel",)),                     # v7x: 2 TCs
    )(x, w_packed, b_packed)


@partial(jax.jit, static_argnames=("nb",))
def resblock_nchw(x_nchw, w_packed, b_packed, *, nb):
    """PyTorch-convention entry point: x_nchw (N, C, H, W).
    TODO(synk): an NHWC/(N,H,W*C) pipeline should call resblock_lane_dense
    directly; these two layout ops exist only to honor the NCHW convention."""
    N, C, H, W = x_nchw.shape
    x = jnp.transpose(x_nchw, (0, 2, 3, 1)).reshape(N, H, W * C)
    out = resblock_lane_dense(x, w_packed, b_packed, nb=nb)
    return jnp.transpose(out.reshape(N, H, W, C), (0, 3, 1, 2))


def resblock_reference(x_nchw, w1_oihw, b1, w2_oihw, b2):
    """Pure-JAX f32 reference mirroring the PyTorch forward."""
    dn = ("NCHW", "OIHW", "NCHW")
    xp = jnp.pad(x_nchw, ((0, 0), (0, 0), (1, 1), (1, 1)), mode="reflect")
    y = jax.lax.conv_general_dilated(xp, w1_oihw, (1, 1), "VALID",
                                     dimension_numbers=dn)
    y = jnp.maximum(y + b1[None, :, None, None], 0.0)
    yp = jnp.pad(y, ((0, 0), (0, 0), (1, 1), (1, 1)), mode="reflect")
    z = jax.lax.conv_general_dilated(yp, w2_oihw, (1, 1), "VALID",
                                     dimension_numbers=dn)
    z = z + b2[None, :, None, None]
    return z + x_nchw


if __name__ == "__main__":
    # dim=8 residual block on 16x16 feature maps: W*C = 128 (lane-dense).
    N, C, H, W = 4, 8, 16, 16
    key = jax.random.PRNGKey(0)
    kx, kw1, kb1, kw2, kb2 = jax.random.split(key, 5)

    x = jax.random.normal(kx, (N, C, H, W), dtype=jnp.float32)
    w1 = 0.1 * jax.random.normal(kw1, (C, C, 3, 3), dtype=jnp.float32)
    b1 = 0.1 * jax.random.normal(kb1, (C,), dtype=jnp.float32)
    w2 = 0.1 * jax.random.normal(kw2, (C, C, 3, 3), dtype=jnp.float32)
    b2 = 0.1 * jax.random.normal(kb2, (C,), dtype=jnp.float32)

    # Hoisted: weight folding + bias tiling run once per weight set.
    w_packed, b_packed = prepare_resblock_params(w1, b1, w2, b2, W)

    nb = _pick_subbatch(N, H)        # -> 2: grid=(2,), M = nb*H = 32 per dot
    out = resblock_nchw(x, w_packed, b_packed, nb=nb)
    out = jax.block_until_ready(out)

    ref = resblock_reference(x, w1, b1, w2, b2)
    assert out.shape == (N, C, H, W)
    # bf16 MXU operands (f32 accumulate) give a few e-3 abs error vs the f32
    # reference; tolerance set accordingly (1e-3 needs f32 matmuls).
    err = jnp.max(jnp.abs(out - ref))
    assert jnp.allclose(out, ref, atol=3e-2, rtol=1e-2), f"max abs err {err}"
    print("KERNEL_OK")
</pallas_src>

<mosaic_0001>
module attributes {stable_mosaic.version = 11 : i64} {
  func.func @resblock_kernel(%arg0: i32, %arg1: memref<2x16x128xf32, #tpu.memory_space<vmem>>, %arg2: memref<2x384x128xbf16, #tpu.memory_space<vmem>>, %arg3: memref<2x128xf32, #tpu.memory_space<vmem>>, %arg4: memref<2x16x128xf32, #tpu.memory_space<vmem>>) attributes {dimension_semantics = [#tpu.dimension_semantics<parallel>], iteration_bounds = array<i64: 2>, scalar_prefetch = 0 : i64, scratch_operands = 0 : i64, tpu.core_type = #tpu.core_type<tc>, window_params = [{transform_indices = @transform_0, window_bounds = array<i64: 2, 16, 128>}, {pipeline_mode = #tpu.pipeline_mode<synchronous>, transform_indices = @transform_1, window_bounds = array<i64: 2, 384, 128>}, {pipeline_mode = #tpu.pipeline_mode<synchronous>, transform_indices = @transform_2, window_bounds = array<i64: 2, 128>}, {transform_indices = @transform_3, window_bounds = array<i64: 2, 16, 128>}]} {
    %c0 = arith.constant 0 : index
    %c0_0 = arith.constant 0 : index
    %c0_1 = arith.constant 0 : index
    %0 = vector.load %arg1[%c0, %c0_0, %c0_1] : memref<2x16x128xf32, #tpu.memory_space<vmem>>, vector<2x16x128xf32>
    %1 = vector.extract_strided_slice %0 {offsets = [0, 1, 0], sizes = [2, 1, 128], strides = [1, 1, 1]} : vector<2x16x128xf32> to vector<2x1x128xf32>
    %2 = vector.extract_strided_slice %0 {offsets = [0, 0, 0], sizes = [2, 15, 128], strides = [1, 1, 1]} : vector<2x16x128xf32> to vector<2x15x128xf32>
    %3 = tpu.concatenate %1, %2 in 1 : vector<2x1x128xf32>, vector<2x15x128xf32> -> vector<2x16x128xf32>
    %4 = vector.extract_strided_slice %0 {offsets = [0, 1, 0], sizes = [2, 15, 128], strides = [1, 1, 1]} : vector<2x16x128xf32> to vector<2x15x128xf32>
    %5 = vector.extract_strided_slice %0 {offsets = [0, 14, 0], sizes = [2, 1, 128], strides = [1, 1, 1]} : vector<2x16x128xf32> to vector<2x1x128xf32>
    %6 = tpu.concatenate %4, %5 in 1 : vector<2x15x128xf32>, vector<2x1x128xf32> -> vector<2x16x128xf32>
    %7 = vector.shape_cast %3 : vector<2x16x128xf32> to vector<32x128xf32>
    %8 = arith.truncf %7 : vector<32x128xf32> to vector<32x128xbf16>
    %9 = vector.shape_cast %0 : vector<2x16x128xf32> to vector<32x128xf32>
    %10 = arith.truncf %9 : vector<32x128xf32> to vector<32x128xbf16>
    %11 = vector.shape_cast %6 : vector<2x16x128xf32> to vector<32x128xf32>
    %12 = arith.truncf %11 : vector<32x128xf32> to vector<32x128xbf16>
    %c0_2 = arith.constant 0 : index
    %c0_3 = arith.constant 0 : index
    %c0_4 = arith.constant 0 : index
    %13 = vector.load %arg2[%c0_2, %c0_3, %c0_4] : memref<2x384x128xbf16, #tpu.memory_space<vmem>>, vector<1x128x128xbf16>
    %14 = vector.shape_cast %13 : vector<1x128x128xbf16> to vector<128x128xbf16>
    %cst = arith.constant dense<0.000000e+00> : vector<32x128xf32>
    %15 = tpu.matmul %8, %14, %cst {dimension_numbers = #tpu.dot_dimension_numbers<[1], [0], [0], [1], [0, 0, 1, 1], [], []>} : vector<32x128xbf16>, vector<128x128xbf16>, vector<32x128xf32> -> vector<32x128xf32>
    %c0_5 = arith.constant 0 : index
    %c128 = arith.constant 128 : index
    %c0_6 = arith.constant 0 : index
    %16 = vector.load %arg2[%c0_5, %c128, %c0_6] : memref<2x384x128xbf16, #tpu.memory_space<vmem>>, vector<1x128x128xbf16>
    %17 = vector.shape_cast %16 : vector<1x128x128xbf16> to vector<128x128xbf16>
    %cst_7 = arith.constant dense<0.000000e+00> : vector<32x128xf32>
    %18 = tpu.matmul %10, %17, %cst_7 {dimension_numbers = #tpu.dot_dimension_numbers<[1], [0], [0], [1], [0, 0, 1, 1], [], []>} : vector<32x128xbf16>, vector<128x128xbf16>, vector<32x128xf32> -> vector<32x128xf32>
    %19 = arith.addf %15, %18 : vector<32x128xf32>
    %c0_8 = arith.constant 0 : index
    %c256 = arith.constant 256 : index
    %c0_9 = arith.constant 0 : index
    %20 = vector.load %arg2[%c0_8, %c256, %c0_9] : memref<2x384x128xbf16, #tpu.memory_space<vmem>>, vector<1x128x128xbf16>
    %21 = vector.shape_cast %20 : vector<1x128x128xbf16> to vector<128x128xbf16>
    %cst_10 = arith.constant dense<0.000000e+00> : vector<32x128xf32>
    %22 = tpu.matmul %12, %21, %cst_10 {dimension_numbers = #tpu.dot_dimension_numbers<[1], [0], [0], [1], [0, 0, 1, 1], [], []>} : vector<32x128xbf16>, vector<128x128xbf16>, vector<32x128xf32> -> vector<32x128xf32>
    %23 = arith.addf %19, %22 : vector<32x128xf32>
    %c0_11 = arith.constant 0 : index
    %c0_12 = arith.constant 0 : index
    %24 = vector.load %arg3[%c0_11, %c0_12] : memref<2x128xf32, #tpu.memory_space<vmem>>, vector<1x128xf32>
    %25 = vector.broadcast %24 : vector<1x128xf32> to vector<32x128xf32>
    %26 = arith.addf %23, %25 : vector<32x128xf32>
    %27 = vector.shape_cast %26 : vector<32x128xf32> to vector<2x16x128xf32>
    %cst_13 = arith.constant 0.000000e+00 : f32
    %28 = vector.broadcast %cst_13 : f32 to vector<2x16x128xf32>
    %29 = arith.maximumf %27, %28 : vector<2x16x128xf32>
    %30 = vector.extract_strided_slice %29 {offsets = [0, 1, 0], sizes = [2, 1, 128], strides = [1, 1, 1]} : vector<2x16x128xf32> to vector<2x1x128xf32>
    %31 = vector.extract_strided_slice %29 {offsets = [0, 0, 0], sizes = [2, 15, 128], strides = [1, 1, 1]} : vector<2x16x128xf32> to vector<2x15x128xf32>
    %32 = tpu.concatenate %30, %31 in 1 : vector<2x1x128xf32>, vector<2x15x128xf32> -> vector<2x16x128xf32>
    %33 = vector.extract_strided_slice %29 {offsets = [0, 1, 0], sizes = [2, 15, 128], strides = [1, 1, 1]} : vector<2x16x128xf32> to vector<2x15x128xf32>
    %34 = vector.extract_strided_slice %29 {offsets = [0, 14, 0], sizes = [2, 1, 128], strides = [1, 1, 1]} : vector<2x16x128xf32> to vector<2x1x128xf32>
    %35 = tpu.concatenate %33, %34 in 1 : vector<2x15x128xf32>, vector<2x1x128xf32> -> vector<2x16x128xf32>
    %36 = vector.shape_cast %32 : vector<2x16x128xf32> to vector<32x128xf32>
    %37 = arith.truncf %36 : vector<32x128xf32> to vector<32x128xbf16>
    %38 = vector.shape_cast %29 : vector<2x16x128xf32> to vector<32x128xf32>
    %39 = arith.truncf %38 : vector<32x128xf32> to vector<32x128xbf16>
    %40 = vector.shape_cast %35 : vector<2x16x128xf32> to vector<32x128xf32>
    %41 = arith.truncf %40 : vector<32x128xf32> to vector<32x128xbf16>
    %c1 = arith.constant 1 : index
    %c0_14 = arith.constant 0 : index
    %c0_15 = arith.constant 0 : index
    %42 = vector.load %arg2[%c1, %c0_14, %c0_15] : memref<2x384x128xbf16, #tpu.memory_space<vmem>>, vector<1x128x128xbf16>
    %43 = vector.shape_cast %42 : vector<1x128x128xbf16> to vector<128x128xbf16>
    %cst_16 = arith.constant dense<0.000000e+00> : vector<32x128xf32>
    %44 = tpu.matmul %37, %43, %cst_16 {dimension_numbers = #tpu.dot_dimension_numbers<[1], [0], [0], [1], [0, 0, 1, 1], [], []>} : vector<32x128xbf16>, vector<128x128xbf16>, vector<32x128xf32> -> vector<32x128xf32>
    %c1_17 = arith.constant 1 : index
    %c128_18 = arith.constant 128 : index
    %c0_19 = arith.constant 0 : index
    %45 = vector.load %arg2[%c1_17, %c128_18, %c0_19] : memref<2x384x128xbf16, #tpu.memory_space<vmem>>, vector<1x128x128xbf16>
    %46 = vector.shape_cast %45 : vector<1x128x128xbf16> to vector<128x128xbf16>
    %cst_20 = arith.constant dense<0.000000e+00> : vector<32x128xf32>
    %47 = tpu.matmul %39, %46, %cst_20 {dimension_numbers = #tpu.dot_dimension_numbers<[1], [0], [0], [1], [0, 0, 1, 1], [], []>} : vector<32x128xbf16>, vector<128x128xbf16>, vector<32x128xf32> -> vector<32x128xf32>
    %48 = arith.addf %44, %47 : vector<32x128xf32>
    %c1_21 = arith.constant 1 : index
    %c256_22 = arith.constant 256 : index
    %c0_23 = arith.constant 0 : index
    %49 = vector.load %arg2[%c1_21, %c256_22, %c0_23] : memref<2x384x128xbf16, #tpu.memory_space<vmem>>, vector<1x128x128xbf16>
    %50 = vector.shape_cast %49 : vector<1x128x128xbf16> to vector<128x128xbf16>
    %cst_24 = arith.constant dense<0.000000e+00> : vector<32x128xf32>
    %51 = tpu.matmul %41, %50, %cst_24 {dimension_numbers = #tpu.dot_dimension_numbers<[1], [0], [0], [1], [0, 0, 1, 1], [], []>} : vector<32x128xbf16>, vector<128x128xbf16>, vector<32x128xf32> -> vector<32x128xf32>
    %52 = arith.addf %48, %51 : vector<32x128xf32>
    %c1_25 = arith.constant 1 : index
    %c0_26 = arith.constant 0 : index
    %53 = vector.load %arg3[%c1_25, %c0_26] : memref<2x128xf32, #tpu.memory_space<vmem>>, vector<1x128xf32>
    %54 = vector.broadcast %53 : vector<1x128xf32> to vector<32x128xf32>
    %55 = arith.addf %52, %54 : vector<32x128xf32>
    %56 = vector.shape_cast %55 : vector<32x128xf32> to vector<2x16x128xf32>
    %57 = arith.addf %56, %0 : vector<2x16x128xf32>
    %c0_27 = arith.constant 0 : index
    %c0_28 = arith.constant 0 : index
    %c0_29 = arith.constant 0 : index
    %58 = vector.load %arg4[%c0_27, %c0_28, %c0_29] : memref<2x16x128xf32, #tpu.memory_space<vmem>>, vector<2x16x128xf32>
    tpu.vector_store %arg4[%c0_27, %c0_28, %c0_29], %57 {strides = array<i32>} : memref<2x16x128xf32, #tpu.memory_space<vmem>>, vector<2x16x128xf32>,
    return
  }
  func.func @transform_0(%arg0: i32) -> (i32, i32, i32) {
    %c0_i32 = arith.constant 0 : i32
    %c0_i32_0 = arith.constant 0 : i32
    %c0_i32_1 = arith.constant 0 : i32
    return %arg0, %c0_i32, %c0_i32_0 : i32, i32, i32
  }
  func.func @transform_1(%arg0: i32) -> (i32, i32, i32) {
    %c0_i32 = arith.constant 0 : i32
    %c0_i32_0 = arith.constant 0 : i32
    %c0_i32_1 = arith.constant 0 : i32
    %c0_i32_2 = arith.constant 0 : i32
    return %c0_i32, %c0_i32_0, %c0_i32_1 : i32, i32, i32
  }
  func.func @transform_2(%arg0: i32) -> (i32, i32) {
    %c0_i32 = arith.constant 0 : i32
    %c0_i32_0 = arith.constant 0 : i32
    %c0_i32_1 = arith.constant 0 : i32
    return %c0_i32, %c0_i32_0 : i32, i32
  }
  func.func @transform_3(%arg0: i32) -> (i32, i32, i32) {
    %c0_i32 = arith.constant 0 : i32
    %c0_i32_0 = arith.constant 0 : i32
    %c0_i32_1 = arith.constant 0 : i32
    return %arg0, %c0_i32, %c0_i32_0 : i32, i32, i32
  }
}

</mosaic_0001>

<bundles_post_ra>
// kernel: resblock_nchw.1
= control target key start
LH: loop header
LB: loop body
LE: loop exit
PB: predicated region body
PF: predicated region fallthrough
CT: control target
= control target key end

     0   :  { %s1430_s12 = smov 0   ;;  %s1652_s0 = inlined_call_operand.vmem [shape: f32[4,16,128], index: 0, kind: input, shape index: {}]   ;;  %s1653_s1 = inlined_call_operand.vmem [shape: bf16[2,384,128], index: 1, kind: input, shape index: {}]   ;;  %s1654_s2 = inlined_call_operand.vmem [shape: f32[2,128], index: 2, kind: input, shape index: {}]   ;;  %s1655_s3 = inlined_call_operand.vmem [shape: f32[4,16,128], index: 3, kind: output, shape index: {}]  }
   0x1 LB: > { %s1037_s13 = sadd.s32 4294967295, %s1408_s12   ;;  %p1041_p0 = scmp.ge.s32.totalorder %s1408_s12, 1  ;;  %s1408_s12 = sphi %s1430_s12, %s13_s12  }
   0x2   : > { %p139_p1 = scmp.lt.s32.totalorder %s1408_s12, 3 }
   0x4   : > { %p140_p2 = pnand %p1041_p0, %p139_p1 }
   0x5   : > { %v1354_v0 = vld [vmem:[%s1653_s1 + $0x40] sm:$0xff] (!%p140_p2)   ;;  %s1042_s16 = sshll.u32 (!%p140_p2), %s1037_s13, 1  ;;  %v1355_v1 = vld [vmem:[%s1653_s1 + $0x48] sm:$0xff] (!%p140_p2)   ;;  %v1356_v2 = vld [vmem:[%s1653_s1 + $0x50] sm:$0xff] (!%p140_p2)   ;;  %vm192_vm0 = vcmask (!%p140_p2), 1040384   ;;  %vm205_vm1 = vcmask (!%p140_p2), 1046528  }
   0x6   : > { %143 = sbr.rel (%p140_p2) target bundleno = 608 (0x260), region = 32  ;;  %p166_p3 = scmp.lt.s32.totalorder (!%p140_p2), %s1042_s16, 3  ;;  %1210 = vmatprep.subr.bf16.mxu0 (!%p140_p2), %v1354_v0  ;;  %v1357_v3 = vld [vmem:[%s1653_s1 + $0x58] sm:$0xff] (!%p140_p2)   ;;  %v1358_v7 = vld [vmem:[%s1653_s1 + $0x60] sm:$0xff] (!%p140_p2)   ;;  %v1359_v8 = vld [vmem:[%s1653_s1 + $0x68] sm:$0xff] (!%p140_p2)  }
   0x7   : > { %1211 = vmatpush3.bf16.msra.mxu0 (!%p140_p2), %v1354_v0  ;;  %v1360_v9 = vld [vmem:[%s1653_s1 + $0x70] sm:$0xff] (!%p140_p2)   ;;  %v1361_v10 = vld [vmem:[%s1653_s1 + $0x78] sm:$0xff] (!%p140_p2)   ;;  %v1362_v15 = vld [vmem:[%s1653_s1] sm:$0xff] (!%p140_p2)  }
   0x8   : > { %1212 = vmatprep.subr.bf16.mxu0 (!%p140_p2), %v1355_v1  ;;  %v1378_v17 = vld [vmem:[%s1653_s1 + $0x100] sm:$0xff] (!%p140_p2)   ;;  %v1379_v20 = vld [vmem:[%s1653_s1 + $0x108] sm:$0xff] (!%p140_p2)   ;;  %v1380_v24 = vld [vmem:[%s1653_s1 + $0x110] sm:$0xff] (!%p140_p2)  }
   0x9   : > { %1270 = vmatprep.subr.bf16.mxu1 (!%p140_p2), %v1378_v17  ;;  %v1363_v22 = vld [vmem:[%s1653_s1 + $0x8] sm:$0xff] (!%p140_p2)   ;;  %v1381_v25 = vld [vmem:[%s1653_s1 + $0x118] sm:$0xff] (!%p140_p2)   ;;  %v1364_v26 = vld [vmem:[%s1653_s1 + $0x10] sm:$0xff] (!%p140_p2)  }
   0xa   : > { %1271 = vmatpush3.bf16.msra.mxu1 (!%p140_p2), %v1378_v17  ;;  %v1382_v27 = vld [vmem:[%s1653_s1 + $0x120] sm:$0xff] (!%p140_p2)   ;;  %v1365_v28 = vld [vmem:[%s1653_s1 + $0x18] sm:$0xff] (!%p140_p2)   ;;  %v1383_v29 = vld [vmem:[%s1653_s1 + $0x128] sm:$0xff] (!%p140_p2)  }
   0xb   : > { %1213 = vmatpush3.bf16.msra.mxu0 (!%p140_p2), %v1355_v1  ;;  %1272 = vmatprep.subr.bf16.mxu1 (!%p140_p2), %v1379_v20  ;;  %v1366_v30 = vld [vmem:[%s1653_s1 + $0x20] sm:$0xff] (!%p140_p2)   ;;  %v1367_v31 = vld [vmem:[%s1653_s1 + $0x28] sm:$0xff] (!%p140_p2)   ;;  %v1368_v32 = vld [vmem:[%s1653_s1 + $0x30] sm:$0xff] (!%p140_p2)  }
   0xc   : > { %1214 = vmatprep.subr.bf16.mxu0 (!%p140_p2), %v1356_v2  ;;  %v1369_v37 = vld [vmem:[%s1653_s1 + $0x38] sm:$0xff] (!%p140_p2)   ;;  %v1370_v40 = vld [vmem:[%s1653_s1 + $0x80] sm:$0xff] (!%p140_p2)   ;;  %v1371_v45 = vld [vmem:[%s1653_s1 + $0x88] sm:$0xff] (!%p140_p2)  }
   0xd   : > { %s1657_s16 = smov (!%p166_p3, %s1042_s16), 3  ;;  %v1372_v46 = vld [vmem:[%s1653_s1 + $0x90] sm:$0xff]   ;;  %v1373_v47 = vld [vmem:[%s1653_s1 + $0x98] sm:$0xff]   ;;  %v1374_v48 = vld [vmem:[%s1653_s1 + $0xa0] sm:$0xff]  }
   0xe   : > { %s1148_s21 = sshll.u32 %s1657_s16, 4  ;;  %1273 = vmatpush3.bf16.msra.mxu1 %v1379_v20  ;;  %v1375_v49 = vld [vmem:[%s1653_s1 + $0xa8] sm:$0xff]   ;;  %v1376_v50 = vld [vmem:[%s1653_s1 + $0xb0] sm:$0xff]   ;;  %v1377_v52 = vld [vmem:[%s1653_s1 + $0xb8] sm:$0xff]  }
   0xf   : > { %s170_s24 = scalar_lea.vmem %s1652_s0, %s1148_s21  ;;  %1215 = vmatpush3.bf16.msra.mxu0 %v1356_v2  ;;  %1274 = vmatprep.subr.bf16.mxu1 %v1380_v24  ;;  %v1384_v56 = vld [vmem:[%s1653_s1 + $0x130] sm:$0xff]   ;;  %v1385_v57 = vld [vmem:[%s1653_s1 + $0x138] sm:$0xff]   ;;  %v1386_v58 = vld [vmem:[%s1653_s1 + $0xc0] sm:$0xff]   ;;  %s177_s25 = scalar_lea.vmem %s1655_s3, %s1148_s21 }
  0x10   : > { %v1458_v4 = vld [vmem:[%s170_s24] sm:$0xff]  ;;  %v1460_v5 = vld [vmem:[%s170_s24 + $0x8] sm:$0xff]  ;;  %1216 = vmatprep.subr.bf16.mxu0 %v1357_v3  ;;  %v1479_v14 = vld [vmem:[%s170_s24 + $0x10] sm:$0xff] }
  0x11   : > { %v220_v6 = vpack.c.bf16 %v1460_v5, %v1458_v4  ;;  %v186_v11 = vrot.slane %v1458_v4, 1  ;;  %v193_v12 = vrot.slane %v1458_v4, 7  ;;  %v194_v13 = vrot.slane %v1460_v5, 7  ;;  %v1484_v16 = vld [vmem:[%s170_s24 + $0x18] sm:$0xff]  ;;  %v1072_v59 = vld [vmem:[%s1654_s2] ss:$0 sm:$0xff] }
  0x12   : > { %v221_v21 = vpack.c.bf16 %v1484_v16, %v1479_v14  ;;  %1275 = vmatpush3.bf16.msra.mxu1 %v1380_v24  ;;  %v187_v33 = vrot.slane %v1479_v14, 1  ;;  %v196_v34 = vrot.slane %v1479_v14, 7  ;;  %v197_v35 = vrot.slane %v1484_v16, 7  ;;  %v1387_v24 = vld [vmem:[%s1653_s1 + $0xc8] sm:$0xff]  }
  0x13   : > { %1226 = vmatprep.mubr.bf16.mxu0 %v220_v6  ;;  %1217 = vmatpush3.bf16.msra.mxu0 %v1357_v3  ;;  %v195_v18 = vsel %vm192_vm0, %v193_v12, %v194_v13  ;;  %v203_v19 = vsel %vm192_vm0, %v186_v11, %v193_v12  ;;  %v206_v36 = vrot.slane %v1460_v5, 1  ;;  %v208_v51 = vrot.slane %v1484_v16, 1 }
  0x14   : > { %1218 = vmatprep.subr.bf16.mxu0 %v1358_v7  ;;  %v218_v23 = vpack.c.bf16 %v195_v18, %v203_v19  ;;  %1276 = vmatprep.subr.bf16.mxu1 %v1381_v25  ;;  %v198_v38 = vsel %vm192_vm0, %v196_v34, %v197_v35  ;;  %v204_v39 = vsel %vm192_vm0, %v187_v33, %v196_v34 }
  0x15   : > { %v207_v41 = vsel %vm205_vm1, %v186_v11, %v206_v36  ;;  %v216_v42 = vsel %vm205_vm1, %v206_v36, %v194_v13  ;;  %v219_v43 = vpack.c.bf16 %v198_v38, %v204_v39  ;;  %v209_v53 = vsel %vm205_vm1, %v187_v33, %v208_v51  ;;  %v1389_v36 = vld [vmem:[%s1653_s1 + $0xd8] sm:$0xff]   ;;  %v1391_v38 = vld [vmem:[%s1653_s1 + $0xe8] sm:$0xff]   ;;  %v1392_v39 = vld [vmem:[%s1653_s1 + $0xf0] sm:$0xff]  }
  0x16   : > { %1277 = vmatpush3.bf16.msra.mxu1 %v1381_v25  ;;  %v222_v44 = vpack.c.bf16 %v216_v42, %v207_v41  ;;  %v217_v54 = vsel %vm205_vm1, %v208_v51, %v197_v35  ;;  %v1388_v35 = vld [vmem:[%s1653_s1 + $0xd0] sm:$0xff]   ;;  %v1394_v41 = vld [vmem:[%s1653_s1 + $0x140] sm:$0xff]   ;;  %v1395_v42 = vld [vmem:[%s1653_s1 + $0x148] sm:$0xff]  }
  0x17   : > { %1219 = vmatpush3.bf16.msra.mxu0 %v1358_v7  ;;  %1278 = vmatprep.subr.bf16.mxu1 %v1382_v27  ;;  %v223_v55 = vpack.c.bf16 %v217_v54, %v209_v53 }
  0x18   : > { %1220 = vmatprep.subr.bf16.mxu0 %v1359_v8 }
  0x1a   : > { %1279 = vmatpush3.bf16.msra.mxu1 %v1382_v27 }
  0x1b   : > { %1221 = vmatpush3.bf16.msra.mxu0 %v1359_v8  ;;  %1280 = vmatprep.subr.bf16.mxu1 %v1383_v29 }
  0x1c   : > { %1222 = vmatprep.subr.bf16.mxu0 %v1360_v9 }
  0x1e   : > { %1281 = vmatpush3.bf16.msra.mxu1 %v1383_v29 }
  0x1f   : > { %1223 = vmatpush3.bf16.msra.mxu0 %v1360_v9  ;;  %1282 = vmatprep.subr.bf16.mxu1 %v1384_v56 }
  0x20   : > { %1224 = vmatprep.subr.bf16.mxu0 %v1361_v10 }
  0x22   : > { %1283 = vmatpush3.bf16.msra.mxu1 %v1384_v56 }
  0x23   : > { %1225 = vmatpush3.bf16.msra.mxu0 %v1361_v10  ;;  %1284 = vmatprep.subr.bf16.mxu1 %v1385_v57 }
  0x24   : > { %1230 = vmatprep.subr.bf16.mxu0 %v1362_v15 }
  0x26   : > { %1227 = vmatmul.mubr.bf16.vlgmr.msra.gmra.mrb[0].mxu0 %v221_v21  ;;  %1285 = vmatpush3.bf16.msra.mxu1 %v1385_v57 }
  0x27   : > { %1231 = vmatpush3.bf16.msra.mxu0 %v1362_v15  ;;  %1246 = vmatprep.mubr.bf16.mxu0 %v218_v23 }
  0x28   : > { %1232 = vmatprep.subr.bf16.mxu0 %v1363_v22  ;;  %1290 = vmatprep.subr.bf16.mxu1 %v1386_v58 }
  0x2b   : > { %1233 = vmatpush3.bf16.msra.mxu0 %v1363_v22 }
  0x2c   : > { %1234 = vmatprep.subr.bf16.mxu0 %v1364_v26 }
  0x2f   : > { %1235 = vmatpush3.bf16.msra.mxu0 %v1364_v26 }
  0x30   : > { %1236 = vmatprep.subr.bf16.mxu0 %v1365_v28 }
  0x33   : > { %1237 = vmatpush3.bf16.msra.mxu0 %v1365_v28 }
  0x34   : > { %1238 = vmatprep.subr.bf16.mxu0 %v1366_v30 }
  0x37   : > { %1239 = vmatpush3.bf16.msra.mxu0 %v1366_v30 }
  0x38   : > { %1240 = vmatprep.subr.bf16.mxu0 %v1367_v31 }
  0x3b   : > { %1241 = vmatpush3.bf16.msra.mxu0 %v1367_v31 }
  0x3c   : > { %1242 = vmatprep.subr.bf16.mxu0 %v1368_v32 }
  0x3f   : > { %1243 = vmatpush3.bf16.msra.mxu0 %v1368_v32 }
  0x40   : > { %1244 = vmatprep.subr.bf16.mxu0 %v1369_v37 }
  0x43   : > { %1245 = vmatpush3.bf16.msra.mxu0 %v1369_v37  ;;  %v1390_v37 = vld [vmem:[%s1653_s1 + $0xe0] sm:$0xff]  }
  0x44   : > { %1250 = vmatprep.subr.bf16.mxu0 %v1370_v40 }
  0x46   : > { %1247 = vmatmul.mubr.bf16.vlgmr.msra.gmra.mrb[0].mxu0 %v219_v43  ;;  %v1396_v43 = vld [vmem:[%s1653_s1 + $0x150] sm:$0xff]  }
  0x47   : > { %1251 = vmatpush3.bf16.msra.mxu0 %v1370_v40  ;;  %1266 = vmatprep.mubr.bf16.mxu0 %v222_v44  ;;  %v1393_v40 = vld [vmem:[%s1653_s1 + $0xf8] sm:$0xff]  }
  0x48   : > { %1252 = vmatprep.subr.bf16.mxu0 %v1371_v45  ;;  %v1397_v44 = vld [vmem:[%s1653_s1 + $0x158] sm:$0xff]  }
  0x4b   : > { %1253 = vmatpush3.bf16.msra.mxu0 %v1371_v45  ;;  %v1398_v45 = vld [vmem:[%s1653_s1 + $0x160] sm:$0xff]  }
  0x4c   : > { %1254 = vmatprep.subr.bf16.mxu0 %v1372_v46 }
  0x4f   : > { %1255 = vmatpush3.bf16.msra.mxu0 %v1372_v46  ;;  %v1399_v46 = vld [vmem:[%s1653_s1 + $0x168] sm:$0xff]  }
  0x50   : > { %1256 = vmatprep.subr.bf16.mxu0 %v1373_v47 }
  0x53   : > { %1257 = vmatpush3.bf16.msra.mxu0 %v1373_v47  ;;  %v1400_v47 = vld [vmem:[%s1653_s1 + $0x170] sm:$0xff]  }
  0x54   : > { %1258 = vmatprep.subr.bf16.mxu0 %v1374_v48 }
  0x57   : > { %1259 = vmatpush3.bf16.msra.mxu0 %v1374_v48  ;;  %v1401_v48 = vld [vmem:[%s1653_s1 + $0x178] sm:$0xff]  }
  0x58   : > { %1260 = vmatprep.subr.bf16.mxu0 %v1375_v49 }
  0x5b   : > { %1261 = vmatpush3.bf16.msra.mxu0 %v1375_v49  ;;  %v1145_v49 = vld [vmem:[%s1654_s2 + $0x1] ss:$0 sm:$0xff] }
  0x5c   : > { %1262 = vmatprep.subr.bf16.mxu0 %v1376_v50 }
  0x5f   : > { %1263 = vmatpush3.bf16.msra.mxu0 %v1376_v50 }
  0x60   : > { %1264 = vmatprep.subr.bf16.mxu0 %v1377_v52 }
  0x63   : > { %1265 = vmatpush3.bf16.msra.mxu0 %v1377_v52 }
  0x66   : > { %1267 = vmatmul.mubr.bf16.vlgmr.msra.gmra.mrb[0].mxu0 %v223_v55 }
 0x139   : > { %v1268_v60 = vpop.f32.mrb[0].mxu0 }
 0x13a   : > { %v574_v61 = vadd.f32 %v1268_v60, %v1072_v59  ;;  %v548_v62 = vpop.f32.mrb[1].mxu0 }
 0x13b   : > { %v572_v63 = vadd.f32 %v1072_v59, %v548_v62  ;;  %v1269_v0 = vpop.f32.mrb[2].mxu0 }
 0x13c   : > { %v578_v1 = vmax.f32 %v574_v61, 0.0  ;;  %v575_v2 = vadd.f32 %v1269_v0, %v1072_v59  ;;  %v551_v3 = vpop.f32.mrb[3].mxu0 }
 0x13d   : > { %v576_v6 = vmax.f32 %v572_v63, 0.0  ;;  %v573_v7 = vadd.f32 %v1072_v59, %v551_v3 }
 0x13e   : > { %v583_v8 = vrot.slane %v578_v1, 1  ;;  %v591_v9 = vrot.slane %v578_v1, 7  ;;  %v579_v10 = vmax.f32 %v575_v2, 0.0 }
 0x13f   : > { %v582_v11 = vrot.slane %v576_v6, 1  ;;  %v588_v12 = vrot.slane %v576_v6, 7  ;;  %v577_v13 = vmax.f32 %v573_v7, 0.0 }
 0x140   : > { %v592_v15 = vrot.slane %v579_v10, 7  ;;  %v602_v17 = vrot.slane %v579_v10, 1  ;;  %v615_v18 = vpack.c.bf16 %v579_v10, %v578_v1  ;;  %v599_v22 = vsel %vm192_vm0, %v583_v8, %v591_v9 }
 0x141   : > { %v589_v19 = vrot.slane %v577_v13, 7  ;;  %v600_v20 = vrot.slane %v577_v13, 1  ;;  %v614_v21 = vpack.c.bf16 %v577_v13, %v576_v6  ;;  %v598_v23 = vsel %vm192_vm0, %v582_v11, %v588_v12 }
 0x142   : > { %v593_v25 = vsel %vm192_vm0, %v591_v9, %v592_v15  ;;  %v603_v26 = vsel %vm205_vm1, %v583_v8, %v602_v17  ;;  %v611_v27 = vsel %vm205_vm1, %v602_v17, %v592_v15 }
 0x143   : > { %1286 = vmatprep.mubr.bf16.mxu1 %v614_v21  ;;  %v590_v28 = vsel %vm192_vm0, %v588_v12, %v589_v19  ;;  %v613_v29 = vpack.c.bf16 %v593_v25, %v599_v22  ;;  %v601_v30 = vsel %vm205_vm1, %v582_v11, %v600_v20  ;;  %v610_v31 = vsel %vm205_vm1, %v600_v20, %v589_v19 }
 0x144   : > { %1287 = vmatmul.mubr.bf16.vlgmr.msra.gmra.mrb[0].mxu1 %v615_v18  ;;  %v612_v32 = vpack.c.bf16 %v590_v28, %v598_v23  ;;  %v616_v33 = vpack.c.bf16 %v610_v31, %v601_v30  ;;  %v617_v34 = vpack.c.bf16 %v611_v27, %v603_v26 }
 0x145   : > { %1291 = vmatpush3.bf16.msra.mxu1 %v1386_v58 }
 0x146   : > { %1306 = vmatprep.mubr.bf16.mxu1 %v612_v32  ;;  %1292 = vmatprep.subr.bf16.mxu1 %v1387_v24 }
 0x149   : > { %1293 = vmatpush3.bf16.msra.mxu1 %v1387_v24 }
 0x14a   : > { %1294 = vmatprep.subr.bf16.mxu1 %v1388_v35 }
 0x14d   : > { %1295 = vmatpush3.bf16.msra.mxu1 %v1388_v35 }
 0x14e   : > { %1296 = vmatprep.subr.bf16.mxu1 %v1389_v36 }
 0x151   : > { %1297 = vmatpush3.bf16.msra.mxu1 %v1389_v36 }
 0x152   : > { %1298 = vmatprep.subr.bf16.mxu1 %v1390_v37 }
 0x155   : > { %1299 = vmatpush3.bf16.msra.mxu1 %v1390_v37 }
 0x156   : > { %1300 = vmatprep.subr.bf16.mxu1 %v1391_v38 }
 0x159   : > { %1301 = vmatpush3.bf16.msra.mxu1 %v1391_v38 }
 0x15a   : > { %1302 = vmatprep.subr.bf16.mxu1 %v1392_v39 }
 0x15d   : > { %1303 = vmatpush3.bf16.msra.mxu1 %v1392_v39 }
 0x15e   : > { %1304 = vmatprep.subr.bf16.mxu1 %v1393_v40 }
 0x161   : > { %1305 = vmatpush3.bf16.msra.mxu1 %v1393_v40 }
 0x162   : > { %1310 = vmatprep.subr.bf16.mxu1 %v1394_v41 }
 0x164   : > { %1307 = vmatmul.mubr.bf16.vlgmr.msra.gmra.mrb[0].mxu1 %v613_v29 }
 0x165   : > { %1311 = vmatpush3.bf16.msra.mxu1 %v1394_v41  ;;  %1326 = vmatprep.mubr.bf16.mxu1 %v616_v33 }
 0x166   : > { %1312 = vmatprep.subr.bf16.mxu1 %v1395_v42 }
 0x169   : > { %1313 = vmatpush3.bf16.msra.mxu1 %v1395_v42 }
 0x16a   : > { %1314 = vmatprep.subr.bf16.mxu1 %v1396_v43 }
 0x16d   : > { %1315 = vmatpush3.bf16.msra.mxu1 %v1396_v43 }
 0x16e   : > { %1316 = vmatprep.subr.bf16.mxu1 %v1397_v44 }
 0x171   : > { %1317 = vmatpush3.bf16.msra.mxu1 %v1397_v44 }
 0x172   : > { %1318 = vmatprep.subr.bf16.mxu1 %v1398_v45 }
 0x175   : > { %1319 = vmatpush3.bf16.msra.mxu1 %v1398_v45 }
 0x176   : > { %1320 = vmatprep.subr.bf16.mxu1 %v1399_v46 }
 0x179   : > { %1321 = vmatpush3.bf16.msra.mxu1 %v1399_v46 }
 0x17a   : > { %1322 = vmatprep.subr.bf16.mxu1 %v1400_v47 }
 0x17d   : > { %1323 = vmatpush3.bf16.msra.mxu1 %v1400_v47 }
 0x17e   : > { %1324 = vmatprep.subr.bf16.mxu1 %v1401_v48 }
 0x181   : > { %1325 = vmatpush3.bf16.msra.mxu1 %v1401_v48 }
 0x184   : > { %1327 = vmatmul.mubr.bf16.vlgmr.msra.gmra.mrb[0].mxu1 %v617_v34 }
 0x257   : > { %v1328_v50 = vpop.f32.mrb[0].mxu1 }
 0x258   : > { %v969_v51 = vadd.f32 %v1328_v50, %v1145_v49  ;;  %v943_v52 = vpop.f32.mrb[1].mxu1 }
 0x259   : > { %v967_v53 = vadd.f32 %v1145_v49, %v943_v52  ;;  %v1329_v54 = vpop.f32.mrb[2].mxu1 }
 0x25a   : > { %v970_v55 = vadd.f32 %v1329_v54, %v1145_v49  ;;  %v946_v56 = vpop.f32.mrb[3].mxu1  ;;  %v973_v59 = vadd.f32 %v969_v51, %v1479_v14 }
 0x25b   : > { %v971_v57 = vadd.f32 %v967_v53, %v1458_v4  ;;  %v968_v58 = vadd.f32 %v1145_v49, %v946_v56 }
 0x25c   : > { %977 = vst [vmem:[%s177_s25 + $0x10] sm:$0xff] %v973_v59  ;;  %v974_v61 = vadd.f32 %v970_v55, %v1484_v16 }
 0x25d   : > { %975 = vst [vmem:[%s177_s25] sm:$0xff] %v971_v57  ;;  %v972_v60 = vadd.f32 %v968_v58, %v1460_v5 }
 0x25e   : > { %978 = vst [vmem:[%s177_s25 + $0x18] sm:$0xff] %v974_v61 }
 0x25f   : > { %976 = vst [vmem:[%s177_s25 + $0x8] sm:$0xff] %v972_v60 }
 0x260 PF: > { %s13_s12 = sadd.s32 1, %s1408_s12  }
 0x261   : > { %p10_p4 = scmp.ge.s32.totalorder %s13_s12, 4  }
 0x263   :  { %12 = sbr.rel (!%p10_p4) target bundleno = 1 (0x1), region = 63 }

</bundles_post_ra>
